<compile_context>
chip_gen: v6e
topology: v6e:2x2x1
jax: 0.10.0
libtpu: 0.0.40
codegen_flags: <defaults>
</compile_context>

<pallas_src>
import functools

import jax
import jax.numpy as jnp
import numpy as np
from jax.experimental import pallas as pl
from jax.experimental.pallas import tpu as pltpu

EPS = 1e-5


def _deconv2d_block_kernel(x_ref, w_ref, m_ref, o_ref, *,
                           n_taps, tap_offsets, cout, n_phase, L, inv_count):
    """Per-batch fused: phase-decomposed deconv + InstanceNorm + ReLU.

    x_ref : (1, Cin_pad, Lz)             bf16  flattened reflect+zero padded input
    w_ref : (n_taps, n_phase*Cout, Cin_pad) bf16  per-tap, phase-stacked weights
    m_ref : (n_phase, 1, L)              f32   valid-pixel mask (1 = real pixel)
    o_ref : (1, n_phase*Cout, L)         f32   phase-major wide output
    """
    # Phase-stacked deconv: each tap is a contiguous flat-offset slice of the
    # padded input, contracted on the MXU against that tap's (PH*Cout, Cin_pad)
    # weight block.  No zero-dilated activations, no im2col scratch.
    y = None
    for t in range(n_taps):
        off = tap_offsets[t]
        part = jnp.dot(w_ref[t], x_ref[0, :, off:off + L],
                       preferred_element_type=jnp.float32)
        y = part if y is None else y + part            # (PH*Cout, L) f32

    # InstanceNorm2d (affine=False, biased variance) over the VALID pixels of
    # all phases.  The ConvTranspose2d bias is a per-channel constant and is
    # cancelled exactly by the mean subtraction, so it is omitted on purpose.
    mean = None
    for ph in range(n_phase):
        s = jnp.sum(y[ph * cout:(ph + 1) * cout, :] * m_ref[ph],
                    axis=1, keepdims=True)             # (Cout, 1)
        mean = s if mean is None else mean + s
    mean = mean * inv_count

    var = None
    for ph in range(n_phase):
        d = (y[ph * cout:(ph + 1) * cout, :] - mean) * m_ref[ph]
        v = jnp.sum(d * d, axis=1, keepdims=True)
        var = v if var is None else var + v
    var = var * inv_count

    scale = jax.lax.rsqrt(var + EPS)                   # (Cout, 1)
    mean_f = jnp.concatenate([mean] * n_phase, axis=0)     # (PH*Cout, 1)
    scale_f = jnp.concatenate([scale] * n_phase, axis=0)

    # ReLU + store (garbage wide columns are masked from stats above and
    # cropped by the wrapper).
    o_ref[0] = jnp.maximum((y - mean_f) * scale_f, 0.0).astype(o_ref.dtype)


@functools.partial(jax.jit,
                   static_argnames=("kernel_size", "stride", "padding", "out_padding"))
def deconv2d_block(x, w, b=None, *, kernel_size, stride=1, padding=0, out_padding=0):
    """x: (N, Cin, H, W); w: torch ConvTranspose2d layout (Cin, Cout, K, K).

    `b` (ConvTranspose2d bias) is accepted for signature parity but unused:
    with norm='in' (InstanceNorm2d affine=False) a per-channel constant bias
    is exactly cancelled by the mean subtraction.
    """
    del b
    N, Cin, H, W = x.shape
    K = kernel_size
    s = stride
    Cout = w.shape[1]
    assert w.shape == (Cin, Cout, K, K)
    assert 0 <= out_padding < max(s, 1)   # PyTorch constraint

    # 1) pad_type='reflect' (applied BEFORE the deconv: self.deconv(self.pad(x))).
    if padding > 0:
        x_p = jnp.pad(x, ((0, 0), (0, 0), (padding, padding), (padding, padding)),
                      mode="reflect")
    else:
        x_p = x
    Hp, Wp = H + 2 * padding, W + 2 * padding

    # 2) Sub-pixel (phase) decomposition of the stride-s transposed conv:
    #    out[o, s*a+r, s*b+c] = sum_{dh,dw,i} W[i,o,s*dh+r,s*dw+c] * x_p[i,a-dh,b-dw]
    #    with only D = ceil(K/s) shifts per axis, on the UN-dilated input.
    Hout = (Hp - 1) * s + K + out_padding
    Wout = (Wp - 1) * s + K + out_padding
    D = -(-K // s)                    # taps per axis
    PH = s * s                        # number of phases
    A = -(-Hout // s)                 # wide rows per phase
    B = -(-Wout // s)                 # valid cols per phase

    # 3) zero pad so every (a-dh, b-dw) read is in range, plus one slack bottom
    #    row so the in-kernel flat-offset tap slices never run OOB.
    top = left = D - 1
    bottom = max(A - Hp, 0) + 1
    right = max(B - Wp, 0)
    Hz, Wz = top + Hp + bottom, left + Wp + right
    L = A * Wz                        # wide (uncropped) per-phase length
    Lz = Hz * Wz

    # 4) pad Cin to a full sublane tile; bf16 operands for the MXU.
    Cin_pad = ((Cin + 7) // 8) * 8
    x_z = jnp.pad(x_p, ((0, 0), (0, Cin_pad - Cin), (top, bottom), (left, right)))
    x_flat = x_z.reshape(N, Cin_pad, Lz).astype(jnp.bfloat16)

    # 5) per-tap, phase-stacked weights:
    #    w_mat[dh*D+dw, (r*s+c)*Cout+o, i] = W[i, o, s*dh+r, s*dw+c]  (0 if >= K)
    w_all = jnp.zeros((D * D, PH, Cout, Cin_pad), jnp.float32)
    for dh in range(D):
        for dw in range(D):
            t = dh * D + dw
            for r in range(s):
                for c in range(s):
                    p, q = s * dh + r, s * dw + c
                    if p < K and q < K:
                        w_all = w_all.at[t, r * s + c, :, :Cin].set(w[:, :, p, q].T)
    w_mat = w_all.reshape(D * D, PH * Cout, Cin_pad).astype(jnp.bfloat16)

    # 6) valid-pixel mask (hoisted out of the kernel), one row per phase.
    a_idx = np.arange(A)[:, None]
    b_idx = np.arange(Wz)[None, :]
    mask_np = np.zeros((PH, A, Wz), np.float32)
    for r in range(s):
        for c in range(s):
            mask_np[r * s + c] = ((s * a_idx + r < Hout) & (s * b_idx + c < Wout))
    mask = jnp.asarray(mask_np.reshape(PH, 1, L))

    # in-kernel flat offsets of the D*D shared taps
    tap_offsets = tuple((top - dh) * Wz + (left - dw)
                        for dh in range(D) for dw in range(D))

    kern = functools.partial(
        _deconv2d_block_kernel, n_taps=D * D, tap_offsets=tap_offsets,
        cout=Cout, n_phase=PH, L=L, inv_count=1.0 / float(Hout * Wout))

    out_wide = pl.pallas_call(
        kern,
        out_shape=jax.ShapeDtypeStruct((N, PH * Cout, L), jnp.float32),
        grid=(N,),
        in_specs=[
            pl.BlockSpec((1, Cin_pad, Lz), lambda n: (n, 0, 0)),
            pl.BlockSpec((D * D, PH * Cout, Cin_pad), lambda n: (0, 0, 0)),
            pl.BlockSpec((PH, 1, L), lambda n: (0, 0, 0)),
        ],
        out_specs=pl.BlockSpec((1, PH * Cout, L), lambda n: (n, 0, 0)),
        compiler_params=pltpu.CompilerParams(dimension_semantics=("parallel",)),
    )(x_flat, w_mat, mask)

    # 7) phase interleave + crop back to NCHW (tiny: ~Cout*Hout*Wout per image).
    y = out_wide.reshape(N, s, s, Cout, A, Wz)[:, :, :, :, :, :B]
    y = y.transpose(0, 3, 4, 1, 5, 2).reshape(N, Cout, A * s, B * s)
    return y[:, :, :Hout, :Wout]


def reference(x, w, b, kernel_size, stride, padding, out_padding):
    """Pure-JAX reference: ReflectionPad2d -> ConvTranspose2d -> InstanceNorm2d -> ReLU."""
    K = kernel_size
    if padding > 0:
        xp = jnp.pad(x, ((0, 0), (0, 0), (padding, padding), (padding, padding)),
                     mode="reflect")
    else:
        xp = x
    wt = jnp.flip(w, (2, 3)).transpose(1, 0, 2, 3)  # (Cout, Cin, K, K)
    y = jax.lax.conv_general_dilated(
        xp, wt, window_strides=(1, 1),
        padding=[(K - 1, K - 1 + out_padding), (K - 1, K - 1 + out_padding)],
        lhs_dilation=(stride, stride),
        dimension_numbers=("NCHW", "OIHW", "NCHW"),
        precision=jax.lax.Precision.HIGHEST)
    y = y + b[None, :, None, None]
    m = y.mean(axis=(2, 3), keepdims=True)
    v = ((y - m) ** 2).mean(axis=(2, 3), keepdims=True)
    y = (y - m) * jax.lax.rsqrt(v + EPS)
    return jnp.maximum(y, 0.0)


if __name__ == "__main__":
    # DeConv2dBlock(input_dim=4, output_dim=8, kernel_size=3, stride=2,
    #               padding=1, out_padding=1, norm='in', activation='relu',
    #               pad_type='reflect', use_drop=False)
    N, Cin, H, W = 2, 4, 16, 16
    Cout, K, stride, padding, out_padding = 8, 3, 2, 1, 1

    key = jax.random.PRNGKey(0)
    kx, kw, kb = jax.random.split(key, 3)

    # Snap inputs/weights to the bf16 grid so the comparison is insensitive to
    # the bf16 MXU operand path inside the kernel.
    def bf16_grid(a):
        return a.astype(jnp.bfloat16).astype(jnp.float32)

    x = bf16_grid(jax.random.normal(kx, (N, Cin, H, W), dtype=jnp.float32))
    # PyTorch ConvTranspose2d weight layout: (in_channels, out_channels, kH, kW)
    w = bf16_grid(0.2 * jax.random.normal(kw, (Cin, Cout, K, K), dtype=jnp.float32))
    b = bf16_grid(0.1 * jax.random.normal(kb, (Cout,), dtype=jnp.float32))

    out = deconv2d_block(x, w, b, kernel_size=K, stride=stride,
                         padding=padding, out_padding=out_padding)
    out = jax.block_until_ready(out)

    ref = jax.block_until_ready(reference(x, w, b, K, stride, padding, out_padding))

    Hout = (H + 2 * padding - 1) * stride + K + out_padding
    Wout = (W + 2 * padding - 1) * stride + K + out_padding
    assert out.shape == (N, Cout, Hout, Wout)
    np.testing.assert_allclose(np.asarray(out), np.asarray(ref), atol=5e-4, rtol=5e-4)
    print("KERNEL_OK")
</pallas_src>

<mosaic_0001>
module attributes {stable_mosaic.version = 11 : i64} {
  func.func @_deconv2d_block_kernel(%arg0: i32, %arg1: memref<1x8x420xbf16, #tpu.memory_space<vmem>>, %arg2: memref<4x32x8xbf16, #tpu.memory_space<vmem>>, %arg3: memref<4x1x380xf32, #tpu.memory_space<vmem>>, %arg4: memref<1x32x380xf32, #tpu.memory_space<vmem>>) attributes {dimension_semantics = [#tpu.dimension_semantics<parallel>], iteration_bounds = array<i64: 2>, scalar_prefetch = 0 : i64, scratch_operands = 0 : i64, tpu.core_type = #tpu.core_type<tc>, window_params = [{transform_indices = @transform_0, window_bounds = array<i64: 1, 8, 420>}, {pipeline_mode = #tpu.pipeline_mode<synchronous>, transform_indices = @transform_1, window_bounds = array<i64: 4, 32, 8>}, {pipeline_mode = #tpu.pipeline_mode<synchronous>, transform_indices = @transform_2, window_bounds = array<i64: 4, 1, 380>}, {transform_indices = @transform_3, window_bounds = array<i64: 1, 32, 380>}]} {
    %c0 = arith.constant 0 : index
    %c0_0 = arith.constant 0 : index
    %c0_1 = arith.constant 0 : index
    %0 = vector.load %arg2[%c0, %c0_0, %c0_1] : memref<4x32x8xbf16, #tpu.memory_space<vmem>>, vector<1x32x8xbf16>
    %1 = vector.shape_cast %0 : vector<1x32x8xbf16> to vector<32x8xbf16>
    %c0_2 = arith.constant 0 : index
    %c0_3 = arith.constant 0 : index
    %c21 = arith.constant 21 : index
    %2 = vector.load %arg1[%c0_2, %c0_3, %c21] : memref<1x8x420xbf16, #tpu.memory_space<vmem>>, vector<1x8x380xbf16>
    %3 = vector.shape_cast %2 : vector<1x8x380xbf16> to vector<8x380xbf16>
    %cst = arith.constant dense<0.000000e+00> : vector<32x380xf32>
    %4 = tpu.matmul %1, %3, %cst {dimension_numbers = #tpu.dot_dimension_numbers<[1], [0], [0], [1], [0, 0, 1, 1], [], []>} : vector<32x8xbf16>, vector<8x380xbf16>, vector<32x380xf32> -> vector<32x380xf32>
    %c1 = arith.constant 1 : index
    %c0_4 = arith.constant 0 : index
    %c0_5 = arith.constant 0 : index
    %5 = vector.load %arg2[%c1, %c0_4, %c0_5] : memref<4x32x8xbf16, #tpu.memory_space<vmem>>, vector<1x32x8xbf16>
    %6 = vector.shape_cast %5 : vector<1x32x8xbf16> to vector<32x8xbf16>
    %c0_6 = arith.constant 0 : index
    %c0_7 = arith.constant 0 : index
    %c20 = arith.constant 20 : index
    %7 = vector.load %arg1[%c0_6, %c0_7, %c20] : memref<1x8x420xbf16, #tpu.memory_space<vmem>>, vector<1x8x380xbf16>
    %8 = vector.shape_cast %7 : vector<1x8x380xbf16> to vector<8x380xbf16>
    %cst_8 = arith.constant dense<0.000000e+00> : vector<32x380xf32>
    %9 = tpu.matmul %6, %8, %cst_8 {dimension_numbers = #tpu.dot_dimension_numbers<[1], [0], [0], [1], [0, 0, 1, 1], [], []>} : vector<32x8xbf16>, vector<8x380xbf16>, vector<32x380xf32> -> vector<32x380xf32>
    %10 = arith.addf %4, %9 : vector<32x380xf32>
    %c2 = arith.constant 2 : index
    %c0_9 = arith.constant 0 : index
    %c0_10 = arith.constant 0 : index
    %11 = vector.load %arg2[%c2, %c0_9, %c0_10] : memref<4x32x8xbf16, #tpu.memory_space<vmem>>, vector<1x32x8xbf16>
    %12 = vector.shape_cast %11 : vector<1x32x8xbf16> to vector<32x8xbf16>
    %c0_11 = arith.constant 0 : index
    %c0_12 = arith.constant 0 : index
    %c1_13 = arith.constant 1 : index
    %13 = vector.load %arg1[%c0_11, %c0_12, %c1_13] : memref<1x8x420xbf16, #tpu.memory_space<vmem>>, vector<1x8x380xbf16>
    %14 = vector.shape_cast %13 : vector<1x8x380xbf16> to vector<8x380xbf16>
    %cst_14 = arith.constant dense<0.000000e+00> : vector<32x380xf32>
    %15 = tpu.matmul %12, %14, %cst_14 {dimension_numbers = #tpu.dot_dimension_numbers<[1], [0], [0], [1], [0, 0, 1, 1], [], []>} : vector<32x8xbf16>, vector<8x380xbf16>, vector<32x380xf32> -> vector<32x380xf32>
    %16 = arith.addf %10, %15 : vector<32x380xf32>
    %c3 = arith.constant 3 : index
    %c0_15 = arith.constant 0 : index
    %c0_16 = arith.constant 0 : index
    %17 = vector.load %arg2[%c3, %c0_15, %c0_16] : memref<4x32x8xbf16, #tpu.memory_space<vmem>>, vector<1x32x8xbf16>
    %18 = vector.shape_cast %17 : vector<1x32x8xbf16> to vector<32x8xbf16>
    %c0_17 = arith.constant 0 : index
    %c0_18 = arith.constant 0 : index
    %c0_19 = arith.constant 0 : index
    %19 = vector.load %arg1[%c0_17, %c0_18, %c0_19] : memref<1x8x420xbf16, #tpu.memory_space<vmem>>, vector<1x8x380xbf16>
    %20 = vector.shape_cast %19 : vector<1x8x380xbf16> to vector<8x380xbf16>
    %cst_20 = arith.constant dense<0.000000e+00> : vector<32x380xf32>
    %21 = tpu.matmul %18, %20, %cst_20 {dimension_numbers = #tpu.dot_dimension_numbers<[1], [0], [0], [1], [0, 0, 1, 1], [], []>} : vector<32x8xbf16>, vector<8x380xbf16>, vector<32x380xf32> -> vector<32x380xf32>
    %22 = arith.addf %16, %21 : vector<32x380xf32>
    %23 = vector.extract_strided_slice %22 {offsets = [0, 0], sizes = [8, 380], strides = [1, 1]} : vector<32x380xf32> to vector<8x380xf32>
    %c0_21 = arith.constant 0 : index
    %c0_22 = arith.constant 0 : index
    %c0_23 = arith.constant 0 : index
    %24 = vector.load %arg3[%c0_21, %c0_22, %c0_23] : memref<4x1x380xf32, #tpu.memory_space<vmem>>, vector<1x1x380xf32>
    %25 = vector.shape_cast %24 : vector<1x1x380xf32> to vector<1x380xf32>
    %26 = vector.broadcast %25 : vector<1x380xf32> to vector<8x380xf32>
    %27 = arith.mulf %23, %26 : vector<8x380xf32>
    %cst_24 = arith.constant dense<0.000000e+00> : vector<8xf32>
    %28 = vector.multi_reduction <add>, %27, %cst_24 [1] : vector<8x380xf32> to vector<8xf32>
    %29 = vector.shape_cast %28 : vector<8xf32> to vector<8x1xf32>
    %30 = vector.extract_strided_slice %22 {offsets = [8, 0], sizes = [8, 380], strides = [1, 1]} : vector<32x380xf32> to vector<8x380xf32>
    %c1_25 = arith.constant 1 : index
    %c0_26 = arith.constant 0 : index
    %c0_27 = arith.constant 0 : index
    %31 = vector.load %arg3[%c1_25, %c0_26, %c0_27] : memref<4x1x380xf32, #tpu.memory_space<vmem>>, vector<1x1x380xf32>
    %32 = vector.shape_cast %31 : vector<1x1x380xf32> to vector<1x380xf32>
    %33 = vector.broadcast %32 : vector<1x380xf32> to vector<8x380xf32>
    %34 = arith.mulf %30, %33 : vector<8x380xf32>
    %cst_28 = arith.constant dense<0.000000e+00> : vector<8xf32>
    %35 = vector.multi_reduction <add>, %34, %cst_28 [1] : vector<8x380xf32> to vector<8xf32>
    %36 = vector.shape_cast %35 : vector<8xf32> to vector<8x1xf32>
    %37 = arith.addf %29, %36 : vector<8x1xf32>
    %38 = vector.extract_strided_slice %22 {offsets = [16, 0], sizes = [8, 380], strides = [1, 1]} : vector<32x380xf32> to vector<8x380xf32>
    %c2_29 = arith.constant 2 : index
    %c0_30 = arith.constant 0 : index
    %c0_31 = arith.constant 0 : index
    %39 = vector.load %arg3[%c2_29, %c0_30, %c0_31] : memref<4x1x380xf32, #tpu.memory_space<vmem>>, vector<1x1x380xf32>
    %40 = vector.shape_cast %39 : vector<1x1x380xf32> to vector<1x380xf32>
    %41 = vector.broadcast %40 : vector<1x380xf32> to vector<8x380xf32>
    %42 = arith.mulf %38, %41 : vector<8x380xf32>
    %cst_32 = arith.constant dense<0.000000e+00> : vector<8xf32>
    %43 = vector.multi_reduction <add>, %42, %cst_32 [1] : vector<8x380xf32> to vector<8xf32>
    %44 = vector.shape_cast %43 : vector<8xf32> to vector<8x1xf32>
    %45 = arith.addf %37, %44 : vector<8x1xf32>
    %46 = vector.extract_strided_slice %22 {offsets = [24, 0], sizes = [8, 380], strides = [1, 1]} : vector<32x380xf32> to vector<8x380xf32>
    %c3_33 = arith.constant 3 : index
    %c0_34 = arith.constant 0 : index
    %c0_35 = arith.constant 0 : index
    %47 = vector.load %arg3[%c3_33, %c0_34, %c0_35] : memref<4x1x380xf32, #tpu.memory_space<vmem>>, vector<1x1x380xf32>
    %48 = vector.shape_cast %47 : vector<1x1x380xf32> to vector<1x380xf32>
    %49 = vector.broadcast %48 : vector<1x380xf32> to vector<8x380xf32>
    %50 = arith.mulf %46, %49 : vector<8x380xf32>
    %cst_36 = arith.constant dense<0.000000e+00> : vector<8xf32>
    %51 = vector.multi_reduction <add>, %50, %cst_36 [1] : vector<8x380xf32> to vector<8xf32>
    %52 = vector.shape_cast %51 : vector<8xf32> to vector<8x1xf32>
    %53 = arith.addf %45, %52 : vector<8x1xf32>
    %cst_37 = arith.constant 6.92520756E-4 : f32
    %54 = vector.broadcast %cst_37 : f32 to vector<8x1xf32>
    %55 = arith.mulf %53, %54 : vector<8x1xf32>
    %56 = vector.extract_strided_slice %22 {offsets = [0, 0], sizes = [8, 380], strides = [1, 1]} : vector<32x380xf32> to vector<8x380xf32>
    %57 = vector.broadcast %55 : vector<8x1xf32> to vector<8x380xf32>
    %58 = arith.subf %56, %57 : vector<8x380xf32>
    %c0_38 = arith.constant 0 : index
    %c0_39 = arith.constant 0 : index
    %c0_40 = arith.constant 0 : index
    %59 = vector.load %arg3[%c0_38, %c0_39, %c0_40] : memref<4x1x380xf32, #tpu.memory_space<vmem>>, vector<1x1x380xf32>
    %60 = vector.shape_cast %59 : vector<1x1x380xf32> to vector<1x380xf32>
    %61 = vector.broadcast %60 : vector<1x380xf32> to vector<8x380xf32>
    %62 = arith.mulf %58, %61 : vector<8x380xf32>
    %63 = arith.mulf %62, %62 : vector<8x380xf32>
    %cst_41 = arith.constant dense<0.000000e+00> : vector<8xf32>
    %64 = vector.multi_reduction <add>, %63, %cst_41 [1] : vector<8x380xf32> to vector<8xf32>
    %65 = vector.shape_cast %64 : vector<8xf32> to vector<8x1xf32>
    %66 = vector.extract_strided_slice %22 {offsets = [8, 0], sizes = [8, 380], strides = [1, 1]} : vector<32x380xf32> to vector<8x380xf32>
    %67 = vector.broadcast %55 : vector<8x1xf32> to vector<8x380xf32>
    %68 = arith.subf %66, %67 : vector<8x380xf32>
    %c1_42 = arith.constant 1 : index
    %c0_43 = arith.constant 0 : index
    %c0_44 = arith.constant 0 : index
    %69 = vector.load %arg3[%c1_42, %c0_43, %c0_44] : memref<4x1x380xf32, #tpu.memory_space<vmem>>, vector<1x1x380xf32>
    %70 = vector.shape_cast %69 : vector<1x1x380xf32> to vector<1x380xf32>
    %71 = vector.broadcast %70 : vector<1x380xf32> to vector<8x380xf32>
    %72 = arith.mulf %68, %71 : vector<8x380xf32>
    %73 = arith.mulf %72, %72 : vector<8x380xf32>
    %cst_45 = arith.constant dense<0.000000e+00> : vector<8xf32>
    %74 = vector.multi_reduction <add>, %73, %cst_45 [1] : vector<8x380xf32> to vector<8xf32>
    %75 = vector.shape_cast %74 : vector<8xf32> to vector<8x1xf32>
    %76 = arith.addf %65, %75 : vector<8x1xf32>
    %77 = vector.extract_strided_slice %22 {offsets = [16, 0], sizes = [8, 380], strides = [1, 1]} : vector<32x380xf32> to vector<8x380xf32>
    %78 = vector.broadcast %55 : vector<8x1xf32> to vector<8x380xf32>
    %79 = arith.subf %77, %78 : vector<8x380xf32>
    %c2_46 = arith.constant 2 : index
    %c0_47 = arith.constant 0 : index
    %c0_48 = arith.constant 0 : index
    %80 = vector.load %arg3[%c2_46, %c0_47, %c0_48] : memref<4x1x380xf32, #tpu.memory_space<vmem>>, vector<1x1x380xf32>
    %81 = vector.shape_cast %80 : vector<1x1x380xf32> to vector<1x380xf32>
    %82 = vector.broadcast %81 : vector<1x380xf32> to vector<8x380xf32>
    %83 = arith.mulf %79, %82 : vector<8x380xf32>
    %84 = arith.mulf %83, %83 : vector<8x380xf32>
    %cst_49 = arith.constant dense<0.000000e+00> : vector<8xf32>
    %85 = vector.multi_reduction <add>, %84, %cst_49 [1] : vector<8x380xf32> to vector<8xf32>
    %86 = vector.shape_cast %85 : vector<8xf32> to vector<8x1xf32>
    %87 = arith.addf %76, %86 : vector<8x1xf32>
    %88 = vector.extract_strided_slice %22 {offsets = [24, 0], sizes = [8, 380], strides = [1, 1]} : vector<32x380xf32> to vector<8x380xf32>
    %89 = vector.broadcast %55 : vector<8x1xf32> to vector<8x380xf32>
    %90 = arith.subf %88, %89 : vector<8x380xf32>
    %c3_50 = arith.constant 3 : index
    %c0_51 = arith.constant 0 : index
    %c0_52 = arith.constant 0 : index
    %91 = vector.load %arg3[%c3_50, %c0_51, %c0_52] : memref<4x1x380xf32, #tpu.memory_space<vmem>>, vector<1x1x380xf32>
    %92 = vector.shape_cast %91 : vector<1x1x380xf32> to vector<1x380xf32>
    %93 = vector.broadcast %92 : vector<1x380xf32> to vector<8x380xf32>
    %94 = arith.mulf %90, %93 : vector<8x380xf32>
    %95 = arith.mulf %94, %94 : vector<8x380xf32>
    %cst_53 = arith.constant dense<0.000000e+00> : vector<8xf32>
    %96 = vector.multi_reduction <add>, %95, %cst_53 [1] : vector<8x380xf32> to vector<8xf32>
    %97 = vector.shape_cast %96 : vector<8xf32> to vector<8x1xf32>
    %98 = arith.addf %87, %97 : vector<8x1xf32>
    %cst_54 = arith.constant 6.92520756E-4 : f32
    %99 = vector.broadcast %cst_54 : f32 to vector<8x1xf32>
    %100 = arith.mulf %98, %99 : vector<8x1xf32>
    %cst_55 = arith.constant 9.99999974E-6 : f32
    %101 = vector.broadcast %cst_55 : f32 to vector<8x1xf32>
    %102 = arith.addf %100, %101 : vector<8x1xf32>
    %103 = math.rsqrt %102 : vector<8x1xf32>
    %104 = tpu.concatenate %55, %55, %55, %55 in 0 : vector<8x1xf32>, vector<8x1xf32>, vector<8x1xf32>, vector<8x1xf32> -> vector<32x1xf32>
    %105 = tpu.concatenate %103, %103, %103, %103 in 0 : vector<8x1xf32>, vector<8x1xf32>, vector<8x1xf32>, vector<8x1xf32> -> vector<32x1xf32>
    %106 = vector.broadcast %104 : vector<32x1xf32> to vector<32x380xf32>
    %107 = arith.subf %22, %106 : vector<32x380xf32>
    %108 = vector.broadcast %105 : vector<32x1xf32> to vector<32x380xf32>
    %109 = arith.mulf %107, %108 : vector<32x380xf32>
    %cst_56 = arith.constant 0.000000e+00 : f32
    %110 = vector.broadcast %cst_56 : f32 to vector<32x380xf32>
    %111 = arith.maximumf %109, %110 : vector<32x380xf32>
    %c0_57 = arith.constant 0 : index
    %c0_58 = arith.constant 0 : index
    %c0_59 = arith.constant 0 : index
    %112 = vector.load %arg4[%c0_57, %c0_58, %c0_59] : memref<1x32x380xf32, #tpu.memory_space<vmem>>, vector<1x32x380xf32>
    %113 = vector.shape_cast %112 : vector<1x32x380xf32> to vector<32x380xf32>
    %114 = vector.shape_cast %111 : vector<32x380xf32> to vector<1x32x380xf32>
    tpu.vector_store %arg4[%c0_57, %c0_58, %c0_59], %114 {strides = array<i32>} : memref<1x32x380xf32, #tpu.memory_space<vmem>>, vector<1x32x380xf32>,
    return
  }
  func.func @transform_0(%arg0: i32) -> (i32, i32, i32) {
    %c0_i32 = arith.constant 0 : i32
    %c0_i32_0 = arith.constant 0 : i32
    %c0_i32_1 = arith.constant 0 : i32
    return %arg0, %c0_i32, %c0_i32_0 : i32, i32, i32
  }
  func.func @transform_1(%arg0: i32) -> (i32, i32, i32) {
    %c0_i32 = arith.constant 0 : i32
    %c0_i32_0 = arith.constant 0 : i32
    %c0_i32_1 = arith.constant 0 : i32
    %c0_i32_2 = arith.constant 0 : i32
    return %c0_i32, %c0_i32_0, %c0_i32_1 : i32, i32, i32
  }
  func.func @transform_2(%arg0: i32) -> (i32, i32, i32) {
    %c0_i32 = arith.constant 0 : i32
    %c0_i32_0 = arith.constant 0 : i32
    %c0_i32_1 = arith.constant 0 : i32
    %c0_i32_2 = arith.constant 0 : i32
    return %c0_i32, %c0_i32_0, %c0_i32_1 : i32, i32, i32
  }
  func.func @transform_3(%arg0: i32) -> (i32, i32, i32) {
    %c0_i32 = arith.constant 0 : i32
    %c0_i32_0 = arith.constant 0 : i32
    %c0_i32_1 = arith.constant 0 : i32
    return %arg0, %c0_i32, %c0_i32_0 : i32, i32, i32
  }
}

</mosaic_0001>

<bundles_post_ra>
// kernel: deconv2d_block.1
= control target key start
LH: loop header
LB: loop body
LE: loop exit
PB: predicated region body
PF: predicated region fallthrough
CT: control target
= control target key end

     0   :  { %8 = vsyncpa [#allocation3], 0  ;;  %s1298_s12 = smov 0   ;;  %s1551_s0 = inlined_call_operand.vmem [shape: bf16[2,8,420], index: 0, kind: input, shape index: {}]   ;;  %s1552_s1 = inlined_call_operand.vmem [shape: bf16[4,32,8], index: 1, kind: input, shape index: {}]   ;;  %s1553_s2 = inlined_call_operand.hbm [shape: f32[4,1,380], index: 2, kind: input, shape index: {}]   ;;  %s1554_s3 = inlined_call_operand.vmem [shape: f32[2,32,380], index: 3, kind: output, shape index: {}]  }
   0x1 LB: > { %s1090_s13 = sadd.s32 4294967295, %s1269_s12   ;;  %p1092_p0 = scmp.ge.s32.totalorder %s1269_s12, 1  ;;  %s1269_s12 = sphi %s1298_s12, %s14_s12  }
   0x2   : > { %p113_p1 = scmp.lt.s32.totalorder %s1269_s12, 3  ;;  %s1271_s14 = smov [#allocation2]  }
   0x3   : > { %s128_s15 = sshll.u32 %s1271_s14, 4  ;;  %p1199_p3 = scmp.eq.s32.totalorder %s1090_s13, 0  ;;  %s129_s15 = int_to_ptr.vmem [resolvable:$true] %s128_s15 }
   0x4   : > { %p1306_p2 = pnand %p1092_p0, %p113_p1  ;;  %s1244_s17 = scalar_lea.vmem %s129_s15, 192 }
   0x5   : > { %p1245_p7 = scmp.ne.s32.totalorder %s129_s15, %s1244_s17  ;;  %p1252_p10 = scmp.lt.s32.totalorder %s129_s15, %s129_s15 }
   0x6   : > { %p1195_p4 = pneg %p1306_p2  ;;  %p1253_p11 = scmp.lt.s32.totalorder %s1244_s17, %s1244_s17 }
   0x8   : > { %p1196_p5 = pnand %p1199_p3, %p1195_p4  ;;  %p1254_p12 = por %p1253_p11, %p1252_p10 }
   0xa   : > { %p1235_p6 = pneg %p1196_p5 }
   0xc   : > { %p1247_p8 = pnand %p1245_p7, %p1235_p6 }
   0xe   : > { %p1248_p9 = pneg %p1247_p8 }
  0x10   : > { %p1255_p13 = pnand %p1254_p12, %p1248_p9 }
  0x12   : > { %1258 = shalt.err (!%p1255_p13)
}
  0x13   : > { %s1272_s18 = smov 48   ;;  %s1273_s19 = smov 3  }
  0x14   : > { %1198 = dma.hbm_to_vmem [thread:$0]  (!%p1196_p5), %s1553_s2, 192, %s129_s15, [#allocation3], %s1272_s18, %s1272_s18, %s1273_s19  }
  0x15   : > { %152 = sbr.rel (%p1306_p2) target bundleno = 866 (0x362), region = 32 }
  0x1a   : > { %1264 = dma.done.wait (%p1199_p3), [#allocation3], 192  }
  0x1b   : > { %1266 = vsyncadd (%p1199_p3), [#allocation3], 4294967104  ;;  %p176_p0 = scmp.lt.s32.totalorder %s1090_s13, 1  ;;  %v1274_v0 = vmov 0   ;;  %vm230_vm0 = vcmask 64512   ;;  %v1223_v5 = vld [vmem:[%s1552_s1 + $0x10] sm:$0xff]  }
  0x1c   : > { %279 = vmatprep.mubr.bf16.mxu0 %v1274_v0  ;;  %1216 = vset.pattern.permute.xlu0 %v1274_v0  ;;  %s1275_s28 = smov 108   ;;  %s1276_s29 = smov 107   ;;  %vm226_vm1 = vcmask 883712   ;;  %vm237_vm2 = vcmask 1043456   ;;  %vm367_vm3 = vcmask 875520   ;;  %v1224_v18 = vld [vmem:[%s1552_s1 + $0x18] sm:$0xff]  }
  0x1d   : > { %s1557_s13 = smov (!%p176_p0, %s1090_s13), 1  ;;  %1217 = vset.pattern.permute.xlu1 %v1274_v0  ;;  %1164 = vmatprep.mubr.msk.bf16.mxu1 %vm230_vm0, %v1223_v5  ;;  %s1277_s30 = smov 127   ;;  %v1225_v28 = vld [vmem:[%s1552_s1] sm:$0xff]   ;;  %vm519_vm4 = vcmask 1039360   ;;  %v1226_v35 = vld [vmem:[%s1552_s1 + $0x8] sm:$0xff]   ;;  %v1229_v41 = vld [vmem:[%s1552_s1 + $0x30] sm:$0xff]  }
  0x1e   : > { %s1149_s22 = sshll.u32 %s1557_s13, 4  ;;  %v1227_v37 = vld [vmem:[%s1552_s1 + $0x20] sm:$0xff]   ;;  %v1228_v38 = vld [vmem:[%s1552_s1 + $0x28] sm:$0xff]   ;;  %v1230_v42 = vld [vmem:[%s1552_s1 + $0x38] sm:$0xff]   ;;  %vm816_vm5 = vcmask 1014784   ;;  %s1190_s20 = smul.u32 96, %s1557_s13 }
  0x1f   : > { %s180_s25 = scalar_lea.vmem %s1551_s0, %s1149_s22 }
  0x20   : > { %v192_v1 = vld [vmem:[%s180_s25 + $0x8] sm:$0xff]  ;;  %v191_v2 = vld [vmem:[%s180_s25] sm:$0xff]  ;;  %s185_s22 = scalar_lea.vmem %s1554_s3, %s1190_s20 }
  0x21   : > { %v1108_v3 = vcombine.low %v192_v1, %v192_v1  ;;  %v1329_v4 = vcombine.low %v191_v2, %v191_v2  ;;  %v1109_v6 = vcombine.high %v192_v1, %v192_v1  ;;  %v1334_v7 = vcombine.high %v191_v2, %v191_v2  ;;  %v1343_v8 = vld [vmem:[%s180_s25 + $0x8] ss:$0 sps:$4 sm:$0xff]  }
  0x22   : > { %v679_v40 = vsel %vm237_vm2, %v1343_v8, 0 }
  0x23   : > { %222 = vrot.lane.b32.xlu1 %v1108_v3, %s1275_s28  ;;  %218 = vrot.lane.b32.xlu0 %v1329_v4, %s1275_s28  ;;  %v673_v39 = vsel %vm237_vm2, %v1329_v4, 0 }
  0x27   : > { %224 = vrot.lane.b32.xlu1 %v1109_v6, %s1275_s28  ;;  %220 = vrot.lane.b32.xlu0 %v1334_v7, %s1275_s28 }
  0x2b   : > { %361 = vrot.lane.b32.xlu1 %v1334_v7, %s1276_s29  ;;  %359 = vrot.lane.b32.xlu0 %v1329_v4, %s1276_s29 }
  0x2f   : > { %365 = vrot.lane.b32.xlu1 %v1109_v6, %s1276_s29  ;;  %363 = vrot.lane.b32.xlu0 %v1108_v3, %s1276_s29  ;;  %v797_v3 = vlaneseq }
  0x33   : > { %513 = vrot.lane.b32.xlu0 %v1329_v4, %s1277_s30  ;;  %515 = vrot.lane.b32.xlu1 %v1334_v7, %s1277_s30 }
  0x37   : > { %517 = vrot.lane.b32.xlu0 %v1343_v8, %s1277_s30 }
  0x95   : > { %v223_v9 = vpop.permute.xlu1 %222  ;;  %v219_v10 = vpop.permute.xlu0 %218 }
  0x99   : > { %v225_v11 = vpop.permute.xlu1 %224  ;;  %v221_v12 = vpop.permute.xlu0 %220 }
  0x9a   : > { %v228_v13 = vsel %vm226_vm1, %v221_v12, %v223_v9  ;;  %v229_v14 = vsel %vm226_vm1, %v223_v9, %v225_v11  ;;  %v227_v15 = vsel %vm226_vm1, %v219_v10, %v221_v12 }
  0x9b   : > { %1110 = vmatprep.subr.msk.bf16.mxu0 %vm237_vm2, %v228_v13  ;;  %1186 = vmatprep.subr.msk.bf16.mxu1 %vm237_vm2, %v229_v14  ;;  %v239_v16 = vsel %vm237_vm2, %v227_v15, 0  ;;  %v245_v17 = vsel %vm237_vm2, %v229_v14, 0  ;;  %v795_v15 = vld [vmem:[#allocation2] sm:$0x7] }
  0x9c   : > { %262 = vmatpush1.bf16.msra.mxu0 %v239_v16  ;;  %1163 = vmatpush3.bf16.msra.mxu1 %v245_v17 }
  0x9d   : > { %v362_v19 = vpop.permute.xlu1 %361  ;;  %v360_v20 = vpop.permute.xlu0 %359 }
  0x9e   : > { %v368_v21 = vsel %vm367_vm3, %v360_v20, %v362_v19  ;;  %v849_v20 = vld [vmem:[#allocation2 + $0x6] sm:$0x7] }
  0x9f   : > { %1111 = vmatmul.mubr.msk.bf16.vlgmr.msra.gmra.mxu0 %vm230_vm0, %v1223_v5  ;;  %1165 = vmatmul.mubr.msk.bf16.vlgmr.msra.gmra.mxu1 %vm230_vm0, %v1224_v18  ;;  %v378_v22 = vsel %vm237_vm2, %v368_v21, 0 }
  0xa0   : > { %289 = vmatprep.mubr.bf16.mxu0 %v1274_v0  ;;  %418 = vmatprep.mubr.bf16.mxu1 %v1274_v0 }
  0xa1   : > { %v366_v23 = vpop.permute.xlu1 %365  ;;  %v364_v24 = vpop.permute.xlu0 %363 }
  0xa2   : > { %v369_v25 = vsel %vm367_vm3, %v362_v19, %v364_v24  ;;  %v370_v26 = vsel %vm367_vm3, %v364_v24, %v366_v23  ;;  %v822_v19 = vld [vmem:[#allocation2 + $0x3] sm:$0x7] }
  0xa3   : > { %v384_v27 = vsel %vm237_vm2, %v370_v26, 0  ;;  %1117 = vmatprep.subr.msk.bf16.mxu1 %vm237_vm2, %v369_v25  ;;  %1187 = vmatprep.subr.msk.bf16.mxu0 %vm237_vm2, %v370_v26  ;;  %v876_v26 = vld [vmem:[#allocation2 + $0x9] sm:$0x7] }
  0xa4   : > { %401 = vmatpush1.bf16.msra.mxu1 %v378_v22  ;;  %1169 = vmatpush3.bf16.msra.mxu0 %v384_v27 }
  0xa5   : > { %v514_v29 = vpop.permute.xlu0 %513  ;;  %v516_v30 = vpop.permute.xlu1 %515 }
  0xa6   : > { %v520_v32 = vsel %vm519_vm4, %v514_v29, %v516_v30 }
  0xa7   : > { %1112 = vmatmul.mubr.msk.bf16.gmra.mxu0 %vm230_vm0, %v1224_v18  ;;  %1118 = vmatmul.mubr.msk.bf16.vlgmr.msra.gmra.mxu1 %vm230_vm0, %v1225_v28  ;;  %v529_v36 = vsel %vm237_vm2, %v520_v32, 0 }
  0xa8   : > { %428 = vmatprep.mubr.bf16.mxu1 %v1274_v0  ;;  %1170 = vmatprep.mubr.msk.bf16.mxu0 %vm230_vm0, %v1225_v28 }
  0xa9   : > { %v518_v31 = vpop.permute.xlu0 %517 }
  0xaa   : > { %v521_v33 = vsel %vm519_vm4, %v516_v30, %v518_v31  ;;  %1188 = vmatprep.subr.msk.bf16.mxu1 %vm237_vm2, %v518_v31  ;;  %v535_v34 = vsel %vm237_vm2, %v518_v31, 0 }
  0xab   : > { %1131 = vmatprep.subr.msk.bf16.mxu0 %vm237_vm2, %v521_v33  ;;  %1175 = vmatpush3.bf16.msra.mxu1 %v535_v34 }
  0xac   : > { %1142 = vmatprep.subr.msk.bf16.mxu1 %vm237_vm2, %v1334_v7 }
  0xaf   : > { %1119 = vmatmul.mubr.msk.bf16.gmra.mxu1 %vm230_vm0, %v1226_v35  ;;  %1171 = vmatmul.mubr.msk.bf16.vlgmr.msra.gmra.mxu0 %vm230_vm0, %v1226_v35 }
  0xb0   : > { %552 = vmatpush1.bf16.msra.mxu0 %v529_v36  ;;  %569 = vmatprep.mubr.bf16.mxu0 %v1274_v0 }
  0xb1   : > { %1176 = vmatprep.mubr.msk.bf16.mxu1 %vm230_vm0, %v1227_v37  ;;  %1189 = vmatprep.subr.msk.bf16.mxu0 %vm237_vm2, %v1343_v8  ;;  %v798_v8 = vshrl.u32 %v797_v3, 7 }
  0xb3   : > { %v799_v13 = vsub.s32 0, %v798_v8  ;;  %v803_v14 = vsub.s32 1, %v798_v8  ;;  %v807_v16 = vsub.s32 2, %v798_v8 }
  0xb5   : > { %v1419_v22 = vrot.slane %v795_v15, %v799_v13  ;;  %v1421_v25 = vrot.slane %v795_v15, %v803_v14  ;;  %v1423_v27 = vrot.slane %v822_v19, %v799_v13  ;;  %v1425_v28 = vrot.slane %v822_v19, %v803_v14 }
  0xb6   : > { %v1427_v29 = vrot.slane %v849_v20, %v799_v13  ;;  %v1429_v30 = vrot.slane %v849_v20, %v807_v16  ;;  %v1431_v35 = vrot.slane %v849_v20, %v803_v14  ;;  %v1433_v36 = vrot.slane %v795_v15, %v807_v16 }
  0xb7   : > { %1132 = vmatmul.mubr.msk.bf16.vlgmr.msra.gmra.mxu0 %vm230_vm0, %v1227_v37  ;;  %1177 = vmatmul.mubr.msk.bf16.vlgmr.msra.gmra.mxu1 %vm230_vm0, %v1228_v38  ;;  %v1435_v37 = vrot.slane %v876_v26, %v799_v13 }
  0xb8   : > { %696 = vmatpush1.bf16.msra.mxu1 %v673_v39  ;;  %1181 = vmatpush3.bf16.msra.mxu0 %v679_v40  ;;  %v1439_v39 = vrot.slane %v822_v19, %v807_v16  ;;  %v1441_v40 = vrot.slane %v876_v26, %v807_v16 }
  0xb9   : > { %579 = vmatprep.mubr.bf16.mxu0 %v1274_v0  ;;  %713 = vmatprep.mubr.bf16.mxu1 %v1274_v0 }
  0xbf   : > { %1133 = vmatmul.mubr.msk.bf16.gmra.mxu0 %vm230_vm0, %v1228_v38  ;;  %1143 = vmatmul.mubr.msk.bf16.vlgmr.msra.gmra.mxu1 %vm230_vm0, %v1229_v41  ;;  %v1437_v38 = vrot.slane %v876_v26, %v803_v14 }
  0xc0   : > { %723 = vmatprep.mubr.bf16.mxu1 %v1274_v0  ;;  %1182 = vmatprep.mubr.msk.bf16.mxu0 %vm230_vm0, %v1229_v41 }
  0xc7   : > { %1144 = vmatmul.mubr.msk.bf16.gmra.mxu1 %vm230_vm0, %v1230_v42  ;;  %1183 = vmatmul.mubr.msk.bf16.vlgmr.msra.gmra.mxu0 %vm230_vm0, %v1230_v42 }
 0x15f   : > { %v281_v43 = vpop.f32.mrf.mxu0  ;;  %v1409_v44 = vpop.f32.mrf.mxu1 }
 0x161   : > { %v283_v45 = vpop.f32.mrf.mxu0  ;;  %v1411_v46 = vpop.f32.mrf.mxu1 }
 0x163   : > { %v285_v47 = vpop.f32.mrf.mxu0  ;;  %v1413_v48 = vpop.f32.mrf.mxu1 }
 0x165   : > { %v287_v49 = vpop.f32.mrf.mxu0  ;;  %v1415_v50 = vpop.f32.mrf.mxu1 }
 0x167   : > { %v291_v51 = vpop.f32.mrf.mxu0  ;;  %v420_v52 = vpop.f32.mrf.mxu1 }
 0x168   : > { %v421_v31 = vadd.f32 %v420_v52, %v281_v43 }
 0x169   : > { %v293_v53 = vpop.f32.mrf.mxu0  ;;  %v422_v54 = vpop.f32.mrf.mxu1 }
 0x16a   : > { %v423_v21 = vadd.f32 %v422_v54, %v283_v45 }
 0x16b   : > { %v295_v55 = vpop.f32.mrf.mxu0  ;;  %v424_v56 = vpop.f32.mrf.mxu1 }
 0x16c   : > { %v425_v41 = vadd.f32 %v424_v56, %v285_v47 }
 0x16d   : > { %v1417_v57 = vpop.f32.mrf.mxu0  ;;  %v426_v58 = vpop.f32.mrf.mxu1 }
 0x16e   : > { %v427_v42 = vadd.f32 %v426_v58, %v287_v49 }
 0x16f   : > { %v430_v59 = vpop.f32.mrf.mxu1  ;;  %v1172_v60 = vpop.f32.mrf.mxu0 }
 0x170   : > { %v431_v3 = vadd.f32 %v430_v59, %v291_v51 }
 0x171   : > { %v432_v61 = vpop.f32.mrf.mxu1  ;;  %v473_v62 = vpop.f32.mrf.mxu0 }
 0x172   : > { %v433_v8 = vadd.f32 %v432_v61, %v293_v53  ;;  %v474_v13 = vadd.f32 %v473_v62, %v1411_v46 }
 0x173   : > { %v434_v63 = vpop.f32.mrf.mxu1  ;;  %v1173_v0 = vpop.f32.mrf.mxu0 }
 0x174   : > { %v435_v15 = vadd.f32 %v434_v63, %v295_v55  ;;  %v485_v14 = vadd.f32 %v1173_v0, %v1413_v48 }
 0x175   : > { %v436_v1 = vpop.f32.mrf.mxu1  ;;  %v476_v2 = vpop.f32.mrf.mxu0 }
 0x176   : > { %v437_v49 = vadd.f32 %v436_v1, %v1417_v57  ;;  %v477_v56 = vadd.f32 %v476_v2, %v1415_v50 }
 0x177   : > { %v571_v4 = vpop.f32.mrf.mxu0  ;;  %v1178_v5 = vpop.f32.mrf.mxu1 }
 0x178   : > { %v639_v45 = vadd.f32 %v571_v4, %v421_v31 }
 0x179   : > { %v573_v6 = vpop.f32.mrf.mxu0  ;;  %v624_v7 = vpop.f32.mrf.mxu1 }
 0x17a   : > { %v640_v32 = vadd.f32 %v573_v6, %v423_v21  ;;  %v482_v6 = vadd.f32 %v1172_v60, %v1409_v44  ;;  %v641_v4 = vadd.f32 %v624_v7, %v474_v13 }
 0x17b   : > { %v575_v9 = vpop.f32.mrf.mxu0  ;;  %v1179_v10 = vpop.f32.mrf.mxu1 }
 0x17c   : > { %v647_v58 = vadd.f32 %v1178_v5, %v482_v6  ;;  %v642_v51 = vadd.f32 %v575_v9, %v425_v41  ;;  %v650_v55 = vadd.f32 %v1179_v10, %v485_v14 }
 0x17d   : > { %v577_v11 = vpop.f32.mrf.mxu0  ;;  %v627_v12 = vpop.f32.mrf.mxu1 }
 0x17e   : > { %v643_v19 = vadd.f32 %v577_v11, %v427_v42  ;;  %v644_v60 = vadd.f32 %v627_v12, %v477_v56 }
 0x17f   : > { %v581_v17 = vpop.f32.mrf.mxu0  ;;  %v715_v18 = vpop.f32.mrf.mxu1 }
 0x180   : > { %v1448_v20 = vadd.f32 %v715_v18, %v639_v45  ;;  %v645_v63 = vadd.f32 %v581_v17, %v431_v3 }
 0x181   : > { %v583_v23 = vpop.f32.mrf.mxu0  ;;  %v717_v24 = vpop.f32.mrf.mxu1 }
 0x182   : > { %v1443_v54 = vadd.f32 %v717_v24, %v640_v32  ;;  %v646_v59 = vadd.f32 %v583_v23, %v433_v8  ;;  %v812_v50 = vmul.f32 %v1419_v22, %v1448_v20 }
 0x183   : > { %v585_v33 = vpop.f32.mrf.mxu0  ;;  %v719_v34 = vpop.f32.mrf.mxu1 }
 0x184   : > { %v813_v44 = vmul.f32 %v1421_v25, %v1443_v54  ;;  %v648_v61 = vadd.f32 %v585_v33, %v435_v15  ;;  %v1460_v57 = vadd.f32 %v719_v34, %v642_v51 }
 0x185   : > { %v587_v43 = vpop.f32.mrf.mxu0  ;;  %v721_v52 = vpop.f32.mrf.mxu1 }
 0x186   : > { %v1454_v46 = vadd.f32 %v721_v52, %v643_v19  ;;  %v649_v5 = vadd.f32 %v587_v43, %v437_v49  ;;  %v815_v21 = vadd.f32 %v813_v44, %v812_v50  ;;  %v839_v32 = vmul.f32 %v1423_v27, %v1460_v57 }
 0x187   : > { %v725_v16 = vpop.f32.mrf.mxu1  ;;  %v1184_v47 = vpop.f32.mrf.mxu0 }
 0x188   : > { %v840_v11 = vmul.f32 %v1425_v28, %v1454_v46  ;;  %v1472_v12 = vadd.f32 %v725_v16, %v645_v63  ;;  %v1474_v23 = vadd.f32 %v1184_v47, %v647_v58 }
 0x189   : > { %v727_v53 = vpop.f32.mrf.mxu1  ;;  %v768_v48 = vpop.f32.mrf.mxu0 }
 0x18a   : > { %v1456_v62 = vadd.f32 %v768_v48, %v641_v4  ;;  %v1462_v0 = vadd.f32 %v727_v53, %v646_v59  ;;  %v866_v52 = vmul.f32 %v1427_v29, %v1472_v12  ;;  %v842_v3 = vadd.f32 %v840_v11, %v839_v32 }
 0x18b   : > { %v729_v1 = vpop.f32.mrf.mxu1  ;;  %v1185_v2 = vpop.f32.mrf.mxu0  ;;  %v868_v13 = vmul.f32 %v1429_v30, %v1474_v23 }
 0x18c   : > { %v1464_v7 = vadd.f32 %v729_v1, %v648_v61  ;;  %v1466_v9 = vadd.f32 %v1185_v2, %v650_v55  ;;  %v814_v10 = vmul.f32 %v1433_v36, %v1456_v62  ;;  %v867_v33 = vmul.f32 %v1431_v35, %v1462_v0 }
 0x18d   : > { %v731_v17 = vpop.f32.mrf.mxu1  ;;  %v771_v18 = vpop.f32.mrf.mxu0  ;;  %v870_v47 = vsel %vm816_vm5, %v868_v13, 0.0 }
 0x18e   : > { %v1476_v24 = vadd.f32 %v731_v17, %v649_v5  ;;  %v1478_v26 = vadd.f32 %v771_v18, %v644_v60  ;;  %v817_v31 = vsel %vm816_vm5, %v814_v10, 0.0  ;;  %v895_v41 = vmul.f32 %v1441_v40, %v1466_v9 }
 0x18f   : > { %v818_v34 = vadd.f32 %v817_v31, %v815_v21  ;;  %v893_v42 = vmul.f32 %v1435_v37, %v1464_v7  ;;  %v869_v19 = vadd.f32 %v867_v33, %v866_v52 }
 0x190   : > { %v894_v45 = vmul.f32 %v1437_v38, %v1476_v24  ;;  %v841_v43 = vmul.f32 %v1439_v39, %v1478_v26  ;;  %v897_v14 = vsel %vm816_vm5, %v895_v41, 0.0 }
 0x191   : > { %819 = vadd.xlane.f32.xlu1 %v818_v34  ;;  %v871_v49 = vadd.f32 %v870_v47, %v869_v19 }
 0x192   : > { %v843_v6 = vsel %vm816_vm5, %v841_v43, 0.0  ;;  %v896_v8 = vadd.f32 %v894_v45, %v893_v42 }
 0x193   : > { %v844_v15 = vadd.f32 %v843_v6, %v842_v3 }
 0x194   : > { %v898_v16 = vadd.f32 %v897_v14, %v896_v8 }
 0x195   : > { %845 = vadd.xlane.f32.xlu0 %v844_v15 }
 0x196   : > { %899 = vadd.xlane.f32.xlu1 %v898_v16 }
 0x199   : > { %872 = vadd.xlane.f32.xlu0 %v871_v49 }
 0x21a   : > { %v820_v56 = vpop.xlane.xlu1 %819 }
 0x21e   : > { %v846_v58 = vpop.xlane.xlu0 %845 }
 0x21f   : > { %v847_v4 = vadd.f32 %v846_v58, %v820_v56  ;;  %v900_v44 = vpop.xlane.xlu1 %899 }
 0x222   : > { %v873_v51 = vpop.xlane.xlu0 %872 }
 0x223   : > { %v874_v59 = vadd.f32 %v873_v51, %v847_v4 }
 0x225   : > { %v901_v53 = vadd.f32 %v900_v44, %v874_v59 }
 0x227   : > { %v902_v48 = vmul.f32 0.00069252076, %v901_v53 }
 0x229   : > { %v917_v55 = vsub.f32 %v1460_v57, %v902_v48  ;;  %v918_v60 = vsub.f32 %v1454_v46, %v902_v48  ;;  %v919_v61 = vsub.f32 %v1478_v26, %v902_v48  ;;  %v903_v63 = vsub.f32 %v1448_v20, %v902_v48 }
 0x22a   : > { %v904_v50 = vsub.f32 %v1443_v54, %v902_v48  ;;  %v905_v1 = vsub.f32 %v1456_v62, %v902_v48  ;;  %v947_v2 = vsub.f32 %v1464_v7, %v902_v48  ;;  %v948_v5 = vsub.f32 %v1476_v24, %v902_v48 }
 0x22b   : > { %v920_v10 = vmul.f32 %v917_v55, %v1423_v27  ;;  %v921_v11 = vmul.f32 %v918_v60, %v1425_v28  ;;  %v922_v17 = vmul.f32 %v919_v61, %v1439_v39  ;;  %v906_v18 = vmul.f32 %v903_v63, %v1419_v22 }
 0x22c   : > { %v907_v21 = vmul.f32 %v904_v50, %v1421_v25  ;;  %v908_v31 = vmul.f32 %v905_v1, %v1433_v36  ;;  %v949_v32 = vsub.f32 %v1466_v9, %v902_v48  ;;  %v950_v33 = vmul.f32 %v947_v2, %v1435_v37 }
 0x22d   : > { %v923_v34 = vmul.f32 %v920_v10, %v920_v10  ;;  %v924_v41 = vmul.f32 %v921_v11, %v921_v11  ;;  %v925_v42 = vmul.f32 %v922_v17, %v922_v17  ;;  %v909_v45 = vmul.f32 %v906_v18, %v906_v18 }
 0x22e   : > { %v910_v43 = vmul.f32 %v907_v21, %v907_v21  ;;  %v911_v27 = vmul.f32 %v908_v31, %v908_v31  ;;  %v951_v28 = vmul.f32 %v948_v5, %v1437_v38  ;;  %v952_v39 = vmul.f32 %v949_v32, %v1441_v40 }
 0x22f   : > { %v926_v52 = vadd.f32 %v924_v41, %v923_v34  ;;  %v927_v22 = vsel %vm816_vm5, %v925_v42, 0.0  ;;  %v953_v25 = vmul.f32 %v950_v33, %v950_v33  ;;  %v932_v36 = vsub.f32 %v1472_v12, %v902_v48 }
 0x230   : > { %v912_v3 = vadd.f32 %v910_v43, %v909_v45  ;;  %v913_v6 = vsel %vm816_vm5, %v911_v27, 0.0  ;;  %v954_v37 = vmul.f32 %v951_v28, %v951_v28  ;;  %v955_v8 = vmul.f32 %v952_v39, %v952_v39 }
 0x231   : > { %v928_v13 = vadd.f32 %v927_v22, %v926_v52  ;;  %v933_v15 = vsub.f32 %v1462_v0, %v902_v48  ;;  %v934_v14 = vsub.f32 %v1474_v23, %v902_v48  ;;  %v935_v38 = vmul.f32 %v932_v36, %v1427_v29 }
 0x232   : > { %v914_v19 = vadd.f32 %v913_v6, %v912_v3  ;;  %v956_v40 = vadd.f32 %v954_v37, %v953_v25  ;;  %v957_v16 = vsel %vm816_vm5, %v955_v8, 0.0 }
 0x233   : > { %929 = vadd.xlane.f32.xlu1 %v928_v13  ;;  %v936_v47 = vmul.f32 %v933_v15, %v1431_v35  ;;  %v937_v49 = vmul.f32 %v934_v14, %v1429_v30  ;;  %v938_v56 = vmul.f32 %v935_v38, %v935_v38 }
 0x234   : > { %915 = vadd.xlane.f32.xlu0 %v914_v19  ;;  %v958_v58 = vadd.f32 %v957_v16, %v956_v40 }
 0x235   : > { %v939_v4 = vmul.f32 %v936_v47, %v936_v47  ;;  %v940_v51 = vmul.f32 %v937_v49, %v937_v49 }
 0x237   : > { %959 = vadd.xlane.f32.xlu1 %v958_v58  ;;  %v941_v59 = vadd.f32 %v939_v4, %v938_v56  ;;  %v942_v44 = vsel %vm816_vm5, %v940_v51, 0.0 }
 0x239   : > { %v943_v53 = vadd.f32 %v942_v44, %v941_v59 }
 0x23b   : > { %944 = vadd.xlane.f32.xlu0 %v943_v53 }
 0x251   : > { %967 = vperm.xlu0 %1216, %v902_v48  }
 0x2bc   : > { %v930_v55 = vpop.xlane.xlu1 %929 }
 0x2bd   : > { %v916_v29 = vpop.xlane.xlu0 %915 }
 0x2be   : > { %v931_v60 = vadd.f32 %v930_v55, %v916_v29 }
 0x2c0   : > { %v960_v63 = vpop.xlane.xlu1 %959 }
 0x2c4   : > { %v945_v61 = vpop.xlane.xlu0 %944 }
 0x2c5   : > { %v946_v35 = vadd.f32 %v945_v61, %v931_v60 }
 0x2c7   : > { %v961_v30 = vadd.f32 %v960_v63, %v946_v35 }
 0x2c9   : > { %v962_v50 = vmul.f32 0.00069252076, %v961_v30 }
 0x2cb   : > { %v963_v1 = vadd.f32 1e-05, %v962_v50 }
 0x2cc   : > { %v968_v5 = vpop.permute.xlu0 %967 }
 0x2cd   : > { %1231 = vrsqrt.f32 %v963_v1  ;;  %v970_v10 = vsub.f32 %v1448_v20, %v968_v5  ;;  %v971_v11 = vsub.f32 %v1443_v54, %v968_v5  ;;  %v972_v48 = vsub.f32 %v1456_v62, %v968_v5 }
 0x2ce   : > { %v973_v17 = vsub.f32 %v1460_v57, %v968_v5  ;;  %v974_v18 = vsub.f32 %v1454_v46, %v968_v5  ;;  %v975_v21 = vsub.f32 %v1478_v26, %v968_v5  ;;  %v976_v31 = vsub.f32 %v1472_v12, %v968_v5 }
 0x2cf   : > { %v977_v32 = vsub.f32 %v1462_v0, %v968_v5  ;;  %v978_v33 = vsub.f32 %v1474_v23, %v968_v5  ;;  %v979_v34 = vsub.f32 %v1464_v7, %v968_v5  ;;  %v980_v20 = vsub.f32 %v1476_v24, %v968_v5 }
 0x2d0   : > { %v981_v54 = vsub.f32 %v1466_v9, %v968_v5 }
 0x2da   : > { %v1232_v2 = vpop.eup %1231 }
 0x2db   : > { %984 = vperm.xlu1 %1217, %v1232_v2  }
 0x356   : > { %v985_v62 = vpop.permute.xlu1 %984 }
 0x357   : > { %v987_v41 = vmul.f32 %v985_v62, %v970_v10  ;;  %v988_v57 = vmul.f32 %v985_v62, %v971_v11  ;;  %v989_v42 = vmul.f32 %v985_v62, %v972_v48  ;;  %v990_v45 = vmul.f32 %v985_v62, %v973_v17 }
 0x358   : > { %v991_v46 = vmul.f32 %v985_v62, %v974_v18  ;;  %v992_v43 = vmul.f32 %v985_v62, %v975_v21  ;;  %v993_v26 = vmul.f32 %v985_v62, %v976_v31  ;;  %v994_v27 = vmul.f32 %v985_v62, %v977_v32 }
 0x359   : > { %v995_v0 = vmul.f32 %v985_v62, %v978_v33  ;;  %v996_v12 = vmul.f32 %v985_v62, %v979_v34  ;;  %v997_v7 = vmul.f32 %v985_v62, %v980_v20  ;;  %v998_v23 = vmul.f32 %v985_v62, %v981_v54 }
 0x35a   : > { %v999_v24 = vmax.f32 %v987_v41, 0.0  ;;  %v1000_v28 = vmax.f32 %v988_v57, 0.0  ;;  %v1001_v9 = vmax.f32 %v989_v42, 0.0  ;;  %v1002_v39 = vmax.f32 %v990_v45, 0.0 }
 0x35b   : > { %v1003_v52 = vmax.f32 %v991_v46, 0.0  ;;  %v1004_v22 = vmax.f32 %v992_v43, 0.0  ;;  %v1005_v25 = vmax.f32 %v993_v26, 0.0  ;;  %v1006_v36 = vmax.f32 %v994_v27, 0.0 }
 0x35c   : > { %v1007_v3 = vmax.f32 %v995_v0, 0.0  ;;  %v1008_v6 = vmax.f32 %v996_v12, 0.0  ;;  %v1009_v37 = vmax.f32 %v997_v7, 0.0  ;;  %v1010_v8 = vmax.f32 %v998_v23, 0.0  ;;  %1011 = vst [vmem:[%s185_s22] sm:$0xff] %v999_v24  ;;  %1012 = vst [vmem:[%s185_s22 + $0x8] sm:$0xff] %v1000_v28 }
 0x35d   : > { %1013 = vst.msk [vmem:[%s185_s22 + $0x10] sm:$0xff] %vm816_vm5, %v1001_v9  ;;  %1014 = vst [vmem:[%s185_s22 + $0x18] sm:$0xff] %v1002_v39 }
 0x35e   : > { %1015 = vst [vmem:[%s185_s22 + $0x20] sm:$0xff] %v1003_v52  ;;  %1016 = vst.msk [vmem:[%s185_s22 + $0x28] sm:$0xff] %vm816_vm5, %v1004_v22 }
 0x35f   : > { %1017 = vst [vmem:[%s185_s22 + $0x30] sm:$0xff] %v1005_v25  ;;  %1018 = vst [vmem:[%s185_s22 + $0x38] sm:$0xff] %v1006_v36 }
 0x360   : > { %1019 = vst.msk [vmem:[%s185_s22 + $0x40] sm:$0xff] %vm816_vm5, %v1007_v3  ;;  %1020 = vst [vmem:[%s185_s22 + $0x48] sm:$0xff] %v1008_v6 }
 0x361   : > { %1021 = vst [vmem:[%s185_s22 + $0x50] sm:$0xff] %v1009_v37  ;;  %1022 = vst.msk [vmem:[%s185_s22 + $0x58] sm:$0xff] %vm816_vm5, %v1010_v8 }
 0x362 PF: > { %s14_s12 = sadd.s32 1, %s1269_s12  }
 0x363   : > { %p11_p1 = scmp.ge.s32.totalorder %s14_s12, 4  }
 0x365   :  { %13 = sbr.rel (!%p11_p1) target bundleno = 1 (0x1), region = 73 }
 0x36a   :  { %1044 = vsyncpa [#allocation3], 1 }
 0x36b   :  { %1046 = vsyncpa [#allocation3 + $0x1], 1 }

</bundles_post_ra>
